<compile_context>
chip_gen: v7x
topology: tpu7x:2x2x1
jax: 0.10.0
libtpu: 0.0.40
codegen_flags: <defaults>
</compile_context>

<pallas_src>
import jax
import jax.numpy as jnp
from jax.experimental import pallas as pl
from jax.experimental.pallas import tpu as pltpu


def _eswish_kernel(beta_ref, x_ref, o_ref):
    # beta lives in SMEM (runtime scalar); compute in f32 for fidelity.
    # exp/recip go to the EUP slot and the multiplies to the VPU — neither is
    # anywhere near binding while HBM-bound, so no math micro-opt needed.
    beta = beta_ref[0]
    xf = x_ref[...].astype(jnp.float32)
    y = beta * xf * jax.nn.sigmoid(xf)
    o_ref[...] = y.astype(o_ref.dtype)


def _eswish_2d(x2d, beta_arr, *, target_block_bytes=4 * 1024 * 1024):
    """Run the kernel over a lane-dense (rows, lane) slab."""
    rows, lane = x2d.shape
    itemsize = jnp.dtype(x2d.dtype).itemsize
    # Sublane packing granularity: 8 for 32-bit, 16 for bf16, 32 for 8-bit.
    pack = max(8, 32 // max(itemsize, 1))

    row_bytes = lane * itemsize
    rt_target = max(pack, target_block_bytes // row_bytes)

    if rows <= rt_target:
        rt = rows                       # single full-extent block along rows
    else:
        rt = (rt_target // pack) * pack

    # Megacore: guarantee >= 2 grid steps on slabs large enough to matter so
    # both v7x TensorCores stream (v5e/v6e single-TC paths are unaffected).
    total_bytes = rows * row_bytes
    if total_bytes > (2 << 20) and rows >= 2 * pack and pl.cdiv(rows, rt) < 2:
        rt = max(pack, ((-(-rows // 2)) // pack) * pack)

    grid = (pl.cdiv(rows, rt),)         # masked tail block -> no row padding

    # 2 operands x 2 pipeline buffers x block, plus headroom.  Explicit limit
    # keeps 4 MiB blocks safe on v5e (16 MiB default scoped VMEM) while
    # staying well under every generation's physical VMEM.
    block_bytes = rt * row_bytes
    vmem_limit = int(max(16 << 20, 4 * block_bytes + (8 << 20)))

    # NOTE: input_output_aliases={1: 0} with a donated input would save the
    # output HBM allocation / an XLA copy, but does NOT reduce the 1-read +
    # 1-write HBM traffic of the kernel itself.
    n_elem = rows * lane
    return pl.pallas_call(
        _eswish_kernel,
        out_shape=jax.ShapeDtypeStruct((rows, lane), x2d.dtype),
        grid_spec=pltpu.PrefetchScalarGridSpec(
            num_scalar_prefetch=0,
            grid=grid,
            in_specs=[
                pl.BlockSpec(memory_space=pltpu.MemorySpace.SMEM),   # beta
                pl.BlockSpec((rt, lane), lambda i: (i, 0)),          # x
            ],
            out_specs=pl.BlockSpec((rt, lane), lambda i: (i, 0)),
        ),
        compiler_params=pltpu.CompilerParams(
            dimension_semantics=("parallel",),
            vmem_limit_bytes=vmem_limit,
        ),
        cost_estimate=pl.CostEstimate(
            flops=3 * n_elem,
            transcendentals=n_elem,
            bytes_accessed=2 * n_elem * itemsize,
        ),
    )(beta_arr, x2d)


def eswish(x, beta=1.75):
    """E-Swish applied elementwise to an array of any shape (e.g. NCHW)."""
    orig_shape = x.shape
    dtype = x.dtype
    n = x.size
    if n == 0:
        return x  # zero-length short-circuit

    beta_arr = jnp.asarray([beta], dtype=jnp.float32)

    # Choose the widest lane-dense slab width that divides n exactly, so the
    # reshape is free and no pad / trailing slice (extra HBM passes) is needed.
    lane = None
    for cand in (2048, 1024, 512, 256, 128):
        if n % cand == 0:
            lane = cand
            break

    if lane is not None:
        out2d = _eswish_2d(x.reshape(n // lane, lane), beta_arr)
        return out2d.reshape(orig_shape)

    # Rare fallback (n not a multiple of 128): run the kernel on the largest
    # lane-aligned prefix and finish the < 128-element remainder in plain jnp.
    # This avoids the old pad + kernel + slice path (~3x HBM traffic).
    lane = 128
    n_main = n - (n % lane)
    x_flat = x.reshape(-1)
    pieces = []
    if n_main > 0:
        main = _eswish_2d(x_flat[:n_main].reshape(-1, lane), beta_arr)
        pieces.append(main.reshape(-1))
    rem = x_flat[n_main:].astype(jnp.float32)
    pieces.append((beta_arr[0] * rem * jax.nn.sigmoid(rem)).astype(dtype))
    out = jnp.concatenate(pieces) if len(pieces) > 1 else pieces[0]
    return out.reshape(orig_shape)


if __name__ == "__main__":
    key = jax.random.PRNGKey(0)
    x = jax.random.normal(key, (2, 4, 16, 16), dtype=jnp.float32)

    y = eswish(x, beta=1.75)
    y = jax.block_until_ready(y)

    # Reference check in plain JAX.
    ref = 1.75 * x * jax.nn.sigmoid(x)
    assert y.shape == x.shape and y.dtype == x.dtype
    assert jnp.allclose(y, ref, atol=1e-6, rtol=1e-6), "mismatch vs reference"

    # Non-multiple-of-128 shape, remainder-only path (n < 128).
    x_odd = jax.random.normal(jax.random.PRNGKey(1), (3, 5, 7), dtype=jnp.float32)
    y_odd = jax.block_until_ready(eswish(x_odd, beta=1.75))
    ref_odd = 1.75 * x_odd * jax.nn.sigmoid(x_odd)
    assert jnp.allclose(y_odd, ref_odd, atol=1e-6, rtol=1e-6), "odd-shape mismatch"

    # Non-multiple-of-128 with a lane-aligned prefix (kernel + jnp remainder).
    x_vec = jax.random.normal(jax.random.PRNGKey(2), (1000,), dtype=jnp.float32)
    y_vec = jax.block_until_ready(eswish(x_vec, beta=1.75))
    ref_vec = 1.75 * x_vec * jax.nn.sigmoid(x_vec)
    assert jnp.allclose(y_vec, ref_vec, atol=1e-6, rtol=1e-6), "vector mismatch"

    # Different beta (runtime scalar, same kernel binary) and empty input.
    y_b = jax.block_until_ready(eswish(x, beta=1.0))
    ref_b = 1.0 * x * jax.nn.sigmoid(x)
    assert jnp.allclose(y_b, ref_b, atol=1e-6, rtol=1e-6), "beta=1.0 mismatch"
    assert eswish(jnp.zeros((0, 4), jnp.float32)).shape == (0, 4)

    print("KERNEL_OK")
</pallas_src>

<mosaic_0001>
module attributes {stable_mosaic.version = 11 : i64} {
  func.func @_eswish_kernel(%arg0: i32, %arg1: memref<1xf32, #tpu.memory_space<smem>>, %arg2: memref<1x2048xf32, #tpu.memory_space<vmem>>, %arg3: memref<1x2048xf32, #tpu.memory_space<vmem>>) attributes {dimension_semantics = [#tpu.dimension_semantics<parallel>], iteration_bounds = array<i64: 1>, scalar_prefetch = 0 : i64, scratch_operands = 0 : i64, tpu.core_type = #tpu.core_type<tc>, window_params = [{transform_indices = @transform_0, window_bounds = array<i64: 1>}, {transform_indices = @transform_1, window_bounds = array<i64: 1, 2048>}, {transform_indices = @transform_2, window_bounds = array<i64: 1, 2048>}]} {
    %c0 = arith.constant 0 : index
    %0 = memref.load %arg1[%c0] : memref<1xf32, #tpu.memory_space<smem>>
    %c0_0 = arith.constant 0 : index
    %c0_1 = arith.constant 0 : index
    %1 = vector.load %arg2[%c0_0, %c0_1] : memref<1x2048xf32, #tpu.memory_space<vmem>>, vector<1x2048xf32>
    %2 = vector.broadcast %0 : f32 to vector<1x2048xf32>
    %3 = arith.mulf %2, %1 : vector<1x2048xf32>
    %4 = arith.negf %1 : vector<1x2048xf32>
    %5 = math.exp %4 : vector<1x2048xf32>
    %cst = arith.constant 1.000000e+00 : f32
    %6 = vector.broadcast %cst : f32 to vector<1x2048xf32>
    %7 = arith.addf %6, %5 : vector<1x2048xf32>
    %8 = arith.divf %6, %7 : vector<1x2048xf32>
    %9 = arith.mulf %3, %8 : vector<1x2048xf32>
    %c0_2 = arith.constant 0 : index
    %c0_3 = arith.constant 0 : index
    %10 = vector.load %arg3[%c0_2, %c0_3] : memref<1x2048xf32, #tpu.memory_space<vmem>>, vector<1x2048xf32>
    tpu.vector_store %arg3[%c0_2, %c0_3], %9 {strides = array<i32>} : memref<1x2048xf32, #tpu.memory_space<vmem>>, vector<1x2048xf32>,
    return
  }
  func.func @transform_0(%arg0: i32) -> i32 {
    %c0_i32 = arith.constant 0 : i32
    %c0_i32_0 = arith.constant 0 : i32
    return %c0_i32 : i32
  }
  func.func @transform_1(%arg0: i32) -> (i32, i32) {
    %c0_i32 = arith.constant 0 : i32
    %c0_i32_0 = arith.constant 0 : i32
    return %arg0, %c0_i32 : i32, i32
  }
  func.func @transform_2(%arg0: i32) -> (i32, i32) {
    %c0_i32 = arith.constant 0 : i32
    %c0_i32_0 = arith.constant 0 : i32
    return %arg0, %c0_i32 : i32, i32
  }
}

</mosaic_0001>

<bundles_post_ra>
// kernel: tpu_custom_call.1
= control target key start
LH: loop header
LB: loop body
LE: loop exit
PB: predicated region body
PF: predicated region fallthrough
CT: control target
= control target key end

     0   :  { %8 = vsyncpa [#allocation4], 0  ;;  %s166_s0 = inlined_call_operand.<no memory space> [shape: f32[1], index: 0, kind: input, shape index: {}]   ;;  %s167_s1 = inlined_call_operand.hbm [shape: f32[1,2048], index: 1, kind: input, shape index: {}]   ;;  %s168_s2 = inlined_call_operand.hbm [shape: f32[1,2048], index: 2, kind: output, shape index: {}]  }
   0x1   :  { %9 = vsyncpa [#allocation5], 0  ;;  %s122_s9 = smov [#allocation3]   ;;  %s74_s13 = scalar_lea.hbm %s167_s1, 256 }
   0x2   :  { %s18_s10 = sshll.u32 %s122_s9, 4  ;;  %p75_p0 = scmp.ne.s32.totalorder %s167_s1, %s74_s13  ;;  %s19_s10 = int_to_ptr.vmem [resolvable:$true] %s18_s10 }
   0x3   :  { %p78_p1 = scmp.lt.u32.totalorder %s74_s13, %s167_s1 }
   0x5   :  { %p80_p2 = pnand %p78_p1, %p75_p0 }
   0x7   :  { %83 = shalt.err (!%p80_p2)
}
   0x8   :  { %s84_s18 = scalar_lea.vmem %s19_s10, 256  ;;  %p89_p4 = scmp.lt.s32.totalorder %s19_s10, %s19_s10 }
   0x9   :  { %p85_p3 = scmp.ne.s32.totalorder %s19_s10, %s84_s18  ;;  %p90_p5 = scmp.lt.s32.totalorder %s84_s18, %s84_s18 }
   0xb   :  { %p91_p6 = por %p90_p5, %p89_p4 }
   0xd   :  { %p92_p7 = pnand %p91_p6, %p85_p3 }
   0xf   :  { %95 = shalt.err (!%p92_p7)
}
  0x10   :  { %21 = dma.hbm_to_vmem [thread:$0]  %s167_s1, 256, %s19_s10, [#allocation4]  }
  0x11   :  { %118 = dma.done.wait [#allocation4], 256  }
  0x12   :  { %119 = vsyncadd [#allocation4], 4294967040  ;;  %v26_v0 = vld [vmem:[#allocation3] sm:$0xff]  ;;  %v27_v1 = vld [vmem:[#allocation3 + $0x8] sm:$0xff]  ;;  %v28_v8 = vstv %s166_s0  ;;  %s123_s1 = smov [#allocation6]  }
  0x13   :  { %v62_v2 = vmul.f32 -1.442695, %v26_v0  ;;  %v63_v3 = vmul.f32 -1.442695, %v27_v1  ;;  %v29_v9 = vmul.f32 %v28_v8, %v26_v0  ;;  %v30_v10 = vmul.f32 %v28_v8, %v27_v1  ;;  %s53_s23 = sshll.u32 %s123_s1, 4  ;;  %s54_s23 = int_to_ptr.vmem [resolvable:$true] %s53_s23 }
  0x14   :  { %s96_s24 = scalar_lea.vmem %s54_s23, 256  ;;  %p101_p9 = scmp.lt.s32.totalorder %s54_s23, %s54_s23 }
  0x15   :  { %66 = vpow2.f32 %v62_v2  ;;  %p97_p8 = scmp.ne.s32.totalorder %s54_s23, %s96_s24  ;;  %p102_p10 = scmp.lt.s32.totalorder %s96_s24, %s96_s24 }
  0x16   :  { %68 = vpow2.f32 %v63_v3 }
  0x17   :  { %p103_p11 = por %p102_p10, %p101_p9 }
  0x19   :  { %p104_p12 = pnand %p103_p11, %p97_p8 }
  0x1f   :  { %v67_v4 = vpop.eup %66 }
  0x20   :  { %v69_v5 = vpop.eup %68  ;;  %v37_v6 = vadd.f32 1.0, %v67_v4 }
  0x21   :  { %v38_v7 = vadd.f32 1.0, %v69_v5 }
  0x22   :  { %70 = vrcp.f32 %v37_v6 }
  0x23   :  { %72 = vrcp.f32 %v38_v7 }
  0x2c   :  { %v71_v11 = vpop.eup %70 }
  0x2d   :  { %v73_v12 = vpop.eup %72  ;;  %v43_v13 = vmul.f32 %v71_v11, %v29_v9 }
  0x2e   :  { %v44_v14 = vmul.f32 %v73_v12, %v30_v10 }
  0x2f   :  { %45 = vst [vmem:[#allocation6] sm:$0xff] %v43_v13 }
  0x30   :  { %46 = vst [vmem:[#allocation6 + $0x8] sm:$0xff] %v44_v14 }
  0x31   :  { %107 = shalt.err (!%p104_p12)
}
  0x32   :  { %s108_s26 = scalar_lea.hbm %s168_s2, 256 }
  0x33   :  { %p109_p13 = scmp.ne.s32.totalorder %s168_s2, %s108_s26  ;;  %p112_p0 = scmp.lt.u32.totalorder %s108_s26, %s168_s2 }
  0x35   :  { %p114_p1 = pnand %p112_p0, %p109_p13 }
  0x37   :  { %117 = shalt.err (!%p114_p1)
}
  0x38   :  { %56 = dma.vmem_to_hbm [thread:$0]  %s54_s23, 256, %s168_s2, [#allocation5]  }
  0x39   :  { %120 = dma.done.wait [#allocation5], 256  }
  0x3a   :  { %121 = vsyncadd [#allocation5], 4294967040 }
  0x3b   :  { %60 = vsyncpa [#allocation4], 1 }
  0x3c   :  { %61 = vsyncpa [#allocation5], 1 }

</bundles_post_ra>
